<compile_context>
chip_gen: v7x
topology: tpu7x:2x2x1
jax: 0.10.0
libtpu: 0.0.40
codegen_flags: <defaults>
</compile_context>

<pallas_src>
import math
import jax
import jax.numpy as jnp
from jax.experimental import pallas as pl
from jax.experimental.pallas import tpu as pltpu

# Scaled-down hyperparameters (tutorial uses d_model=512, d_ff=2048, d_k=d_v=64, n_heads=8)
D_MODEL = 32
D_FF    = 64
D_K     = 8
D_V     = 8
N_HEADS = 4
LN_EPS  = 1e-5


def _layer_norm(x):
    # nn.LayerNorm with default (unit gamma, zero beta), biased variance, eps=1e-5
    mean = jnp.mean(x, axis=-1, keepdims=True)
    var = jnp.mean(jnp.square(x - mean), axis=-1, keepdims=True)
    return (x - mean) * jax.lax.rsqrt(var + LN_EPS)


def encoder_layer_kernel(x_ref, mask_ref, wqkv_ref, wo_ref, w1_ref, w2_ref,
                         out_ref, attn_ref, ctx_scratch):
    # One grid step == one batch element (grid axis is "parallel", so v7x's two
    # TensorCores each take half the batch; on v5e/v6e it's a short serial loop).
    x = x_ref[0]                                    # (S, D) f32

    # --- fused QKV projection: one wide MXU push instead of three ---
    qkv = jnp.dot(x, wqkv_ref[...], preferred_element_type=jnp.float32)  # (S, 3*H*Dk)
    q = qkv[:, 0 * N_HEADS * D_K:1 * N_HEADS * D_K]
    k = qkv[:, 1 * N_HEADS * D_K:2 * N_HEADS * D_K]
    v = qkv[:, 2 * N_HEADS * D_K:3 * N_HEADS * D_K]

    # --- mask -> additive bias, computed ONCE (hoisted out of the head loop) ---
    # Keeping the (B,S,S) mask input preserves the PyTorch forward() signature;
    # only a (1,S,S) block per batch element is ever resident in VMEM.
    bias = jnp.where(mask_ref[0] != 0, jnp.float32(-1e9), jnp.float32(0.0))  # (S, S)

    scale = jnp.float32(1.0 / math.sqrt(D_K))
    for h in range(N_HEADS):      # static unroll; per-head results stored immediately
        qh = q[:, h * D_K:(h + 1) * D_K]            # (S, Dk)
        kh = k[:, h * D_K:(h + 1) * D_K]
        vh = v[:, h * D_V:(h + 1) * D_V]

        # q @ k^T without materializing a transposed copy of k.
        sc = jax.lax.dot_general(qh, kh, (((1,), (1,)), ((), ())),
                                 preferred_element_type=jnp.float32) * scale + bias
        sc = sc - jnp.max(sc, axis=-1, keepdims=True)
        p = jnp.exp(sc)
        attn_h = p / jnp.sum(p, axis=-1, keepdims=True)    # exact softmax (torch parity)

        # Store straight into the module's (B, H, S, S) layout — no wrapper transpose.
        attn_ref[0, h] = attn_h
        # Per-head context goes into its slice of the VMEM scratch — no lane-dim concat.
        ctx_scratch[:, h * D_V:(h + 1) * D_V] = jnp.dot(
            attn_h, vh, preferred_element_type=jnp.float32)

    # --- single fc(context) matmul over all heads ---
    ctx_proj = jnp.dot(ctx_scratch[...], wo_ref[...], preferred_element_type=jnp.float32)

    # MultiHeadAttention output: LayerNorm(fc(context) + residual)
    mha = _layer_norm(ctx_proj + x)

    # Position-wise FFN: LayerNorm(W2(relu(W1(x))) + residual)
    h1 = jnp.maximum(jnp.dot(mha, w1_ref[...], preferred_element_type=jnp.float32), 0.0)
    ffn = jnp.dot(h1, w2_ref[...], preferred_element_type=jnp.float32)
    out_ref[0] = _layer_norm(ffn + mha)


def encoder_layer(x, mask, params):
    B, S, D = x.shape
    wq, wk, wv, wo, w1, w2 = params
    # Weight-only fusion (one-time, tiny): one (D, 3*H*Dk) QKV matrix.
    wqkv = jnp.concatenate([wq, wk, wv], axis=1)

    flops = (2 * B * S * D * (3 * N_HEADS * D_K)           # fused qkv projection
             + 2 * B * N_HEADS * S * S * D_K               # scores
             + 2 * B * N_HEADS * S * S * D_V               # context
             + 2 * B * S * (N_HEADS * D_V) * D             # fc(context)
             + 2 * B * S * D * D_FF                        # ffn layer 1
             + 2 * B * S * D_FF * D)                       # ffn layer 2
    transcendentals = B * N_HEADS * S * S + 4 * B * S      # exp + rsqrt
    bytes_accessed = 4 * (x.size + mask.size + wqkv.size + wo.size + w1.size + w2.size
                          + B * S * D + B * N_HEADS * S * S)

    # NOTE: both outputs' last dims (<128) imply masked vst at tutorial size;
    # negligible here, revisit lane-dense packing only if this kernel is hot.
    out, attn = pl.pallas_call(
        encoder_layer_kernel,
        out_shape=(
            jax.ShapeDtypeStruct((B, S, D), jnp.float32),
            jax.ShapeDtypeStruct((B, N_HEADS, S, S), jnp.float32),
        ),
        grid=(B,),
        in_specs=[
            pl.BlockSpec((1, S, D), lambda b: (b, 0, 0)),
            pl.BlockSpec((1, S, S), lambda b: (b, 0, 0)),
            pl.BlockSpec((D, 3 * N_HEADS * D_K), lambda b: (0, 0)),
            pl.BlockSpec((N_HEADS * D_V, D), lambda b: (0, 0)),
            pl.BlockSpec((D, D_FF), lambda b: (0, 0)),
            pl.BlockSpec((D_FF, D), lambda b: (0, 0)),
        ],
        out_specs=(
            pl.BlockSpec((1, S, D), lambda b: (b, 0, 0)),
            pl.BlockSpec((1, N_HEADS, S, S), lambda b: (b, 0, 0, 0)),
        ),
        scratch_shapes=[pltpu.VMEM((S, N_HEADS * D_V), jnp.float32)],
        compiler_params=pltpu.CompilerParams(
            dimension_semantics=("parallel",)),
        cost_estimate=pl.CostEstimate(flops=flops,
                                      transcendentals=transcendentals,
                                      bytes_accessed=bytes_accessed),
    )(x, mask, wqkv, wo, w1, w2)
    return out, attn


def reference(x, mask, params):
    # Pure-JAX mirror of the PyTorch forward, for a correctness check.
    wq, wk, wv, wo, w1, w2 = params
    B, S, D = x.shape
    q = (x @ wq).reshape(B, S, N_HEADS, D_K).transpose(0, 2, 1, 3)
    k = (x @ wk).reshape(B, S, N_HEADS, D_K).transpose(0, 2, 1, 3)
    v = (x @ wv).reshape(B, S, N_HEADS, D_V).transpose(0, 2, 1, 3)
    scores = jnp.einsum('bhqd,bhkd->bhqk', q, k) / math.sqrt(D_K)
    scores = jnp.where(mask[:, None, :, :] != 0, -1e9, scores)
    attn = jax.nn.softmax(scores, axis=-1)
    ctx = jnp.einsum('bhqk,bhkd->bhqd', attn, v).transpose(0, 2, 1, 3).reshape(B, S, N_HEADS * D_V)
    mha_out = _layer_norm(ctx @ wo + x)
    ffn = jnp.maximum(mha_out @ w1, 0.0) @ w2
    return _layer_norm(ffn + mha_out), attn


if __name__ == "__main__":
    B, S = 2, 8
    key = jax.random.PRNGKey(0)
    kx, kq, kk, kv, ko, k1, k2 = jax.random.split(key, 7)

    x = jax.random.normal(kx, (B, S, D_MODEL), dtype=jnp.float32)

    # Deterministic synthetic weights (Linear layers have bias=False in the module).
    wq = jax.random.normal(kq, (D_MODEL, N_HEADS * D_K), jnp.float32) * 0.05
    wk = jax.random.normal(kk, (D_MODEL, N_HEADS * D_K), jnp.float32) * 0.05
    wv = jax.random.normal(kv, (D_MODEL, N_HEADS * D_V), jnp.float32) * 0.05
    wo = jax.random.normal(ko, (N_HEADS * D_V, D_MODEL), jnp.float32) * 0.05
    w1 = jax.random.normal(k1, (D_MODEL, D_FF), jnp.float32) * 0.05
    w2 = jax.random.normal(k2, (D_FF, D_MODEL), jnp.float32) * 0.05
    params = (wq, wk, wv, wo, w1, w2)

    # Padding-style self-attention mask: batch 0 has no padding, batch 1 masks last 2 keys.
    pad_lens = jnp.array([0, 2], dtype=jnp.int32)
    col = jnp.arange(S)[None, None, :]                                # (1,1,S)
    mask = (col >= (S - pad_lens)[:, None, None]).astype(jnp.int32)   # (B,1,S)
    mask = jnp.broadcast_to(mask, (B, S, S)).astype(jnp.int32)        # (B,S,S)

    enc_out, attn = encoder_layer(x, mask, params)
    jax.block_until_ready((enc_out, attn))

    ref_out, ref_attn = reference(x, mask, params)
    assert enc_out.shape == (B, S, D_MODEL) and attn.shape == (B, N_HEADS, S, S)
    assert jnp.allclose(enc_out, ref_out, atol=1e-3, rtol=1e-3)
    assert jnp.allclose(attn, ref_attn, atol=1e-3, rtol=1e-3)

    print("KERNEL_OK")
</pallas_src>

<mosaic_0001>
module attributes {stable_mosaic.version = 11 : i64} {
  func.func @encoder_layer_kernel(%arg0: i32, %arg1: memref<1x8x32xf32, #tpu.memory_space<vmem>>, %arg2: memref<1x8x8xi32, #tpu.memory_space<vmem>>, %arg3: memref<32x96xf32, #tpu.memory_space<vmem>>, %arg4: memref<32x32xf32, #tpu.memory_space<vmem>>, %arg5: memref<32x64xf32, #tpu.memory_space<vmem>>, %arg6: memref<64x32xf32, #tpu.memory_space<vmem>>, %arg7: memref<1x8x32xf32, #tpu.memory_space<vmem>>, %arg8: memref<1x4x8x8xf32, #tpu.memory_space<vmem>>, %arg9: memref<8x32xf32, #tpu.memory_space<vmem>>) attributes {dimension_semantics = [#tpu.dimension_semantics<parallel>], iteration_bounds = array<i64: 2>, scalar_prefetch = 0 : i64, scratch_operands = 1 : i64, tpu.core_type = #tpu.core_type<tc>, window_params = [{transform_indices = @transform_0, window_bounds = array<i64: 1, 8, 32>}, {transform_indices = @transform_1, window_bounds = array<i64: 1, 8, 8>}, {pipeline_mode = #tpu.pipeline_mode<synchronous>, transform_indices = @transform_2, window_bounds = array<i64: 32, 96>}, {pipeline_mode = #tpu.pipeline_mode<synchronous>, transform_indices = @transform_3, window_bounds = array<i64: 32, 32>}, {pipeline_mode = #tpu.pipeline_mode<synchronous>, transform_indices = @transform_4, window_bounds = array<i64: 32, 64>}, {pipeline_mode = #tpu.pipeline_mode<synchronous>, transform_indices = @transform_5, window_bounds = array<i64: 64, 32>}, {transform_indices = @transform_6, window_bounds = array<i64: 1, 8, 32>}, {transform_indices = @transform_7, window_bounds = array<i64: 1, 4, 8, 8>}]} {
    %c0 = arith.constant 0 : index
    %c0_0 = arith.constant 0 : index
    %c0_1 = arith.constant 0 : index
    %0 = vector.load %arg1[%c0, %c0_0, %c0_1] : memref<1x8x32xf32, #tpu.memory_space<vmem>>, vector<1x8x32xf32>
    %1 = vector.shape_cast %0 : vector<1x8x32xf32> to vector<8x32xf32>
    %c0_2 = arith.constant 0 : index
    %c0_3 = arith.constant 0 : index
    %2 = vector.load %arg3[%c0_2, %c0_3] : memref<32x96xf32, #tpu.memory_space<vmem>>, vector<32x96xf32>
    %cst = arith.constant dense<0.000000e+00> : vector<8x96xf32>
    %3 = tpu.matmul %1, %2, %cst {dimension_numbers = #tpu.dot_dimension_numbers<[1], [0], [0], [1], [0, 0, 1, 1], [], []>} : vector<8x32xf32>, vector<32x96xf32>, vector<8x96xf32> -> vector<8x96xf32>
    %4 = vector.extract_strided_slice %3 {offsets = [0, 0], sizes = [8, 32], strides = [1, 1]} : vector<8x96xf32> to vector<8x32xf32>
    %5 = vector.extract_strided_slice %3 {offsets = [0, 32], sizes = [8, 32], strides = [1, 1]} : vector<8x96xf32> to vector<8x32xf32>
    %6 = vector.extract_strided_slice %3 {offsets = [0, 64], sizes = [8, 32], strides = [1, 1]} : vector<8x96xf32> to vector<8x32xf32>
    %c0_4 = arith.constant 0 : index
    %c0_5 = arith.constant 0 : index
    %c0_6 = arith.constant 0 : index
    %7 = vector.load %arg2[%c0_4, %c0_5, %c0_6] : memref<1x8x8xi32, #tpu.memory_space<vmem>>, vector<1x8x8xi32>
    %8 = vector.shape_cast %7 : vector<1x8x8xi32> to vector<8x8xi32>
    %c0_i32 = arith.constant 0 : i32
    %9 = vector.broadcast %c0_i32 : i32 to vector<8x8xi32>
    %10 = arith.cmpi ne, %8, %9 : vector<8x8xi32>
    %cst_7 = arith.constant -1.000000e+09 : f32
    %cst_8 = arith.constant 0.000000e+00 : f32
    %11 = vector.broadcast %cst_7 : f32 to vector<8x8xf32>
    %12 = vector.broadcast %cst_8 : f32 to vector<8x8xf32>
    %13 = arith.select %10, %11, %12 : vector<8x8xi1>, vector<8x8xf32>
    %14 = vector.extract_strided_slice %4 {offsets = [0, 0], sizes = [8, 8], strides = [1, 1]} : vector<8x32xf32> to vector<8x8xf32>
    %15 = vector.extract_strided_slice %5 {offsets = [0, 0], sizes = [8, 8], strides = [1, 1]} : vector<8x32xf32> to vector<8x8xf32>
    %16 = vector.extract_strided_slice %6 {offsets = [0, 0], sizes = [8, 8], strides = [1, 1]} : vector<8x32xf32> to vector<8x8xf32>
    %cst_9 = arith.constant dense<0.000000e+00> : vector<8x8xf32>
    %17 = tpu.matmul %14, %15, %cst_9 {dimension_numbers = #tpu.dot_dimension_numbers<[1], [1], [0], [0], [0, 0, 1, 0], [], []>} : vector<8x8xf32>, vector<8x8xf32>, vector<8x8xf32> -> vector<8x8xf32>
    %cst_10 = arith.constant 0.353553385 : f32
    %18 = vector.broadcast %cst_10 : f32 to vector<8x8xf32>
    %19 = arith.mulf %17, %18 : vector<8x8xf32>
    %20 = arith.addf %19, %13 : vector<8x8xf32>
    %cst_11 = arith.constant dense<0xFF800000> : vector<8xf32>
    %21 = vector.multi_reduction <maximumf>, %20, %cst_11 [1] : vector<8x8xf32> to vector<8xf32>
    %22 = vector.shape_cast %21 : vector<8xf32> to vector<8x1xf32>
    %23 = vector.broadcast %22 : vector<8x1xf32> to vector<8x8xf32>
    %24 = arith.subf %20, %23 : vector<8x8xf32>
    %25 = math.exp %24 : vector<8x8xf32>
    %cst_12 = arith.constant dense<0.000000e+00> : vector<8xf32>
    %26 = vector.multi_reduction <add>, %25, %cst_12 [1] : vector<8x8xf32> to vector<8xf32>
    %27 = vector.shape_cast %26 : vector<8xf32> to vector<8x1xf32>
    %28 = vector.broadcast %27 : vector<8x1xf32> to vector<8x8xf32>
    %29 = arith.divf %25, %28 : vector<8x8xf32>
    %c0_13 = arith.constant 0 : index
    %c0_14 = arith.constant 0 : index
    %c0_15 = arith.constant 0 : index
    %c0_16 = arith.constant 0 : index
    %30 = vector.load %arg8[%c0_13, %c0_14, %c0_15, %c0_16] : memref<1x4x8x8xf32, #tpu.memory_space<vmem>>, vector<1x1x8x8xf32>
    %31 = vector.shape_cast %30 : vector<1x1x8x8xf32> to vector<8x8xf32>
    %32 = vector.shape_cast %29 : vector<8x8xf32> to vector<1x1x8x8xf32>
    tpu.vector_store %arg8[%c0_13, %c0_14, %c0_15, %c0_16], %32 {strides = array<i32>} : memref<1x4x8x8xf32, #tpu.memory_space<vmem>>, vector<1x1x8x8xf32>,
    %cst_17 = arith.constant dense<0.000000e+00> : vector<8x8xf32>
    %33 = tpu.matmul %29, %16, %cst_17 {dimension_numbers = #tpu.dot_dimension_numbers<[1], [0], [0], [1], [0, 0, 1, 1], [], []>} : vector<8x8xf32>, vector<8x8xf32>, vector<8x8xf32> -> vector<8x8xf32>
    %c0_18 = arith.constant 0 : index
    %c0_19 = arith.constant 0 : index
    %34 = vector.load %arg9[%c0_18, %c0_19] : memref<8x32xf32, #tpu.memory_space<vmem>>, vector<8x8xf32>
    tpu.vector_store %arg9[%c0_18, %c0_19], %33 {strides = array<i32>} : memref<8x32xf32, #tpu.memory_space<vmem>>, vector<8x8xf32>,
    %35 = vector.extract_strided_slice %4 {offsets = [0, 8], sizes = [8, 8], strides = [1, 1]} : vector<8x32xf32> to vector<8x8xf32>
    %36 = vector.extract_strided_slice %5 {offsets = [0, 8], sizes = [8, 8], strides = [1, 1]} : vector<8x32xf32> to vector<8x8xf32>
    %37 = vector.extract_strided_slice %6 {offsets = [0, 8], sizes = [8, 8], strides = [1, 1]} : vector<8x32xf32> to vector<8x8xf32>
    %cst_20 = arith.constant dense<0.000000e+00> : vector<8x8xf32>
    %38 = tpu.matmul %35, %36, %cst_20 {dimension_numbers = #tpu.dot_dimension_numbers<[1], [1], [0], [0], [0, 0, 1, 0], [], []>} : vector<8x8xf32>, vector<8x8xf32>, vector<8x8xf32> -> vector<8x8xf32>
    %cst_21 = arith.constant 0.353553385 : f32
    %39 = vector.broadcast %cst_21 : f32 to vector<8x8xf32>
    %40 = arith.mulf %38, %39 : vector<8x8xf32>
    %41 = arith.addf %40, %13 : vector<8x8xf32>
    %cst_22 = arith.constant dense<0xFF800000> : vector<8xf32>
    %42 = vector.multi_reduction <maximumf>, %41, %cst_22 [1] : vector<8x8xf32> to vector<8xf32>
    %43 = vector.shape_cast %42 : vector<8xf32> to vector<8x1xf32>
    %44 = vector.broadcast %43 : vector<8x1xf32> to vector<8x8xf32>
    %45 = arith.subf %41, %44 : vector<8x8xf32>
    %46 = math.exp %45 : vector<8x8xf32>
    %cst_23 = arith.constant dense<0.000000e+00> : vector<8xf32>
    %47 = vector.multi_reduction <add>, %46, %cst_23 [1] : vector<8x8xf32> to vector<8xf32>
    %48 = vector.shape_cast %47 : vector<8xf32> to vector<8x1xf32>
    %49 = vector.broadcast %48 : vector<8x1xf32> to vector<8x8xf32>
    %50 = arith.divf %46, %49 : vector<8x8xf32>
    %c0_24 = arith.constant 0 : index
    %c1 = arith.constant 1 : index
    %c0_25 = arith.constant 0 : index
    %c0_26 = arith.constant 0 : index
    %51 = vector.load %arg8[%c0_24, %c1, %c0_25, %c0_26] : memref<1x4x8x8xf32, #tpu.memory_space<vmem>>, vector<1x1x8x8xf32>
    %52 = vector.shape_cast %51 : vector<1x1x8x8xf32> to vector<8x8xf32>
    %53 = vector.shape_cast %50 : vector<8x8xf32> to vector<1x1x8x8xf32>
    tpu.vector_store %arg8[%c0_24, %c1, %c0_25, %c0_26], %53 {strides = array<i32>} : memref<1x4x8x8xf32, #tpu.memory_space<vmem>>, vector<1x1x8x8xf32>,
    %cst_27 = arith.constant dense<0.000000e+00> : vector<8x8xf32>
    %54 = tpu.matmul %50, %37, %cst_27 {dimension_numbers = #tpu.dot_dimension_numbers<[1], [0], [0], [1], [0, 0, 1, 1], [], []>} : vector<8x8xf32>, vector<8x8xf32>, vector<8x8xf32> -> vector<8x8xf32>
    %c0_28 = arith.constant 0 : index
    %c8 = arith.constant 8 : index
    %55 = vector.load %arg9[%c0_28, %c8] : memref<8x32xf32, #tpu.memory_space<vmem>>, vector<8x8xf32>
    tpu.vector_store %arg9[%c0_28, %c8], %54 {strides = array<i32>} : memref<8x32xf32, #tpu.memory_space<vmem>>, vector<8x8xf32>,
    %56 = vector.extract_strided_slice %4 {offsets = [0, 16], sizes = [8, 8], strides = [1, 1]} : vector<8x32xf32> to vector<8x8xf32>
    %57 = vector.extract_strided_slice %5 {offsets = [0, 16], sizes = [8, 8], strides = [1, 1]} : vector<8x32xf32> to vector<8x8xf32>
    %58 = vector.extract_strided_slice %6 {offsets = [0, 16], sizes = [8, 8], strides = [1, 1]} : vector<8x32xf32> to vector<8x8xf32>
    %cst_29 = arith.constant dense<0.000000e+00> : vector<8x8xf32>
    %59 = tpu.matmul %56, %57, %cst_29 {dimension_numbers = #tpu.dot_dimension_numbers<[1], [1], [0], [0], [0, 0, 1, 0], [], []>} : vector<8x8xf32>, vector<8x8xf32>, vector<8x8xf32> -> vector<8x8xf32>
    %cst_30 = arith.constant 0.353553385 : f32
    %60 = vector.broadcast %cst_30 : f32 to vector<8x8xf32>
    %61 = arith.mulf %59, %60 : vector<8x8xf32>
    %62 = arith.addf %61, %13 : vector<8x8xf32>
    %cst_31 = arith.constant dense<0xFF800000> : vector<8xf32>
    %63 = vector.multi_reduction <maximumf>, %62, %cst_31 [1] : vector<8x8xf32> to vector<8xf32>
    %64 = vector.shape_cast %63 : vector<8xf32> to vector<8x1xf32>
    %65 = vector.broadcast %64 : vector<8x1xf32> to vector<8x8xf32>
    %66 = arith.subf %62, %65 : vector<8x8xf32>
    %67 = math.exp %66 : vector<8x8xf32>
    %cst_32 = arith.constant dense<0.000000e+00> : vector<8xf32>
    %68 = vector.multi_reduction <add>, %67, %cst_32 [1] : vector<8x8xf32> to vector<8xf32>
    %69 = vector.shape_cast %68 : vector<8xf32> to vector<8x1xf32>
    %70 = vector.broadcast %69 : vector<8x1xf32> to vector<8x8xf32>
    %71 = arith.divf %67, %70 : vector<8x8xf32>
    %c0_33 = arith.constant 0 : index
    %c2 = arith.constant 2 : index
    %c0_34 = arith.constant 0 : index
    %c0_35 = arith.constant 0 : index
    %72 = vector.load %arg8[%c0_33, %c2, %c0_34, %c0_35] : memref<1x4x8x8xf32, #tpu.memory_space<vmem>>, vector<1x1x8x8xf32>
    %73 = vector.shape_cast %72 : vector<1x1x8x8xf32> to vector<8x8xf32>
    %74 = vector.shape_cast %71 : vector<8x8xf32> to vector<1x1x8x8xf32>
    tpu.vector_store %arg8[%c0_33, %c2, %c0_34, %c0_35], %74 {strides = array<i32>} : memref<1x4x8x8xf32, #tpu.memory_space<vmem>>, vector<1x1x8x8xf32>,
    %cst_36 = arith.constant dense<0.000000e+00> : vector<8x8xf32>
    %75 = tpu.matmul %71, %58, %cst_36 {dimension_numbers = #tpu.dot_dimension_numbers<[1], [0], [0], [1], [0, 0, 1, 1], [], []>} : vector<8x8xf32>, vector<8x8xf32>, vector<8x8xf32> -> vector<8x8xf32>
    %c0_37 = arith.constant 0 : index
    %c16 = arith.constant 16 : index
    %76 = vector.load %arg9[%c0_37, %c16] : memref<8x32xf32, #tpu.memory_space<vmem>>, vector<8x8xf32>
    tpu.vector_store %arg9[%c0_37, %c16], %75 {strides = array<i32>} : memref<8x32xf32, #tpu.memory_space<vmem>>, vector<8x8xf32>,
    %77 = vector.extract_strided_slice %4 {offsets = [0, 24], sizes = [8, 8], strides = [1, 1]} : vector<8x32xf32> to vector<8x8xf32>
    %78 = vector.extract_strided_slice %5 {offsets = [0, 24], sizes = [8, 8], strides = [1, 1]} : vector<8x32xf32> to vector<8x8xf32>
    %79 = vector.extract_strided_slice %6 {offsets = [0, 24], sizes = [8, 8], strides = [1, 1]} : vector<8x32xf32> to vector<8x8xf32>
    %cst_38 = arith.constant dense<0.000000e+00> : vector<8x8xf32>
    %80 = tpu.matmul %77, %78, %cst_38 {dimension_numbers = #tpu.dot_dimension_numbers<[1], [1], [0], [0], [0, 0, 1, 0], [], []>} : vector<8x8xf32>, vector<8x8xf32>, vector<8x8xf32> -> vector<8x8xf32>
    %cst_39 = arith.constant 0.353553385 : f32
    %81 = vector.broadcast %cst_39 : f32 to vector<8x8xf32>
    %82 = arith.mulf %80, %81 : vector<8x8xf32>
    %83 = arith.addf %82, %13 : vector<8x8xf32>
    %cst_40 = arith.constant dense<0xFF800000> : vector<8xf32>
    %84 = vector.multi_reduction <maximumf>, %83, %cst_40 [1] : vector<8x8xf32> to vector<8xf32>
    %85 = vector.shape_cast %84 : vector<8xf32> to vector<8x1xf32>
    %86 = vector.broadcast %85 : vector<8x1xf32> to vector<8x8xf32>
    %87 = arith.subf %83, %86 : vector<8x8xf32>
    %88 = math.exp %87 : vector<8x8xf32>
    %cst_41 = arith.constant dense<0.000000e+00> : vector<8xf32>
    %89 = vector.multi_reduction <add>, %88, %cst_41 [1] : vector<8x8xf32> to vector<8xf32>
    %90 = vector.shape_cast %89 : vector<8xf32> to vector<8x1xf32>
    %91 = vector.broadcast %90 : vector<8x1xf32> to vector<8x8xf32>
    %92 = arith.divf %88, %91 : vector<8x8xf32>
    %c0_42 = arith.constant 0 : index
    %c3 = arith.constant 3 : index
    %c0_43 = arith.constant 0 : index
    %c0_44 = arith.constant 0 : index
    %93 = vector.load %arg8[%c0_42, %c3, %c0_43, %c0_44] : memref<1x4x8x8xf32, #tpu.memory_space<vmem>>, vector<1x1x8x8xf32>
    %94 = vector.shape_cast %93 : vector<1x1x8x8xf32> to vector<8x8xf32>
    %95 = vector.shape_cast %92 : vector<8x8xf32> to vector<1x1x8x8xf32>
    tpu.vector_store %arg8[%c0_42, %c3, %c0_43, %c0_44], %95 {strides = array<i32>} : memref<1x4x8x8xf32, #tpu.memory_space<vmem>>, vector<1x1x8x8xf32>,
    %cst_45 = arith.constant dense<0.000000e+00> : vector<8x8xf32>
    %96 = tpu.matmul %92, %79, %cst_45 {dimension_numbers = #tpu.dot_dimension_numbers<[1], [0], [0], [1], [0, 0, 1, 1], [], []>} : vector<8x8xf32>, vector<8x8xf32>, vector<8x8xf32> -> vector<8x8xf32>
    %c0_46 = arith.constant 0 : index
    %c24 = arith.constant 24 : index
    %97 = vector.load %arg9[%c0_46, %c24] : memref<8x32xf32, #tpu.memory_space<vmem>>, vector<8x8xf32>
    tpu.vector_store %arg9[%c0_46, %c24], %96 {strides = array<i32>} : memref<8x32xf32, #tpu.memory_space<vmem>>, vector<8x8xf32>,
    %c0_47 = arith.constant 0 : index
    %c0_48 = arith.constant 0 : index
    %98 = vector.load %arg9[%c0_47, %c0_48] : memref<8x32xf32, #tpu.memory_space<vmem>>, vector<8x32xf32>
    %c0_49 = arith.constant 0 : index
    %c0_50 = arith.constant 0 : index
    %99 = vector.load %arg4[%c0_49, %c0_50] : memref<32x32xf32, #tpu.memory_space<vmem>>, vector<32x32xf32>
    %cst_51 = arith.constant dense<0.000000e+00> : vector<8x32xf32>
    %100 = tpu.matmul %98, %99, %cst_51 {dimension_numbers = #tpu.dot_dimension_numbers<[1], [0], [0], [1], [0, 0, 1, 1], [], []>} : vector<8x32xf32>, vector<32x32xf32>, vector<8x32xf32> -> vector<8x32xf32>
    %101 = arith.addf %100, %1 : vector<8x32xf32>
    %cst_52 = arith.constant dense<0.000000e+00> : vector<8xf32>
    %102 = vector.multi_reduction <add>, %101, %cst_52 [1] : vector<8x32xf32> to vector<8xf32>
    %103 = vector.shape_cast %102 : vector<8xf32> to vector<8x1xf32>
    %cst_53 = arith.constant 3.200000e+01 : f32
    %104 = vector.broadcast %cst_53 : f32 to vector<8x1xf32>
    %105 = arith.divf %103, %104 : vector<8x1xf32>
    %106 = vector.broadcast %105 : vector<8x1xf32> to vector<8x32xf32>
    %107 = arith.subf %101, %106 : vector<8x32xf32>
    %108 = arith.mulf %107, %107 : vector<8x32xf32>
    %cst_54 = arith.constant dense<0.000000e+00> : vector<8xf32>
    %109 = vector.multi_reduction <add>, %108, %cst_54 [1] : vector<8x32xf32> to vector<8xf32>
    %110 = vector.shape_cast %109 : vector<8xf32> to vector<8x1xf32>
    %cst_55 = arith.constant 3.200000e+01 : f32
    %111 = vector.broadcast %cst_55 : f32 to vector<8x1xf32>
    %112 = arith.divf %110, %111 : vector<8x1xf32>
    %113 = vector.broadcast %105 : vector<8x1xf32> to vector<8x32xf32>
    %114 = arith.subf %101, %113 : vector<8x32xf32>
    %cst_56 = arith.constant 9.99999974E-6 : f32
    %115 = vector.broadcast %cst_56 : f32 to vector<8x1xf32>
    %116 = arith.addf %112, %115 : vector<8x1xf32>
    %117 = math.rsqrt %116 : vector<8x1xf32>
    %118 = vector.broadcast %117 : vector<8x1xf32> to vector<8x32xf32>
    %119 = arith.mulf %114, %118 : vector<8x32xf32>
    %c0_57 = arith.constant 0 : index
    %c0_58 = arith.constant 0 : index
    %120 = vector.load %arg5[%c0_57, %c0_58] : memref<32x64xf32, #tpu.memory_space<vmem>>, vector<32x64xf32>
    %cst_59 = arith.constant dense<0.000000e+00> : vector<8x64xf32>
    %121 = tpu.matmul %119, %120, %cst_59 {dimension_numbers = #tpu.dot_dimension_numbers<[1], [0], [0], [1], [0, 0, 1, 1], [], []>} : vector<8x32xf32>, vector<32x64xf32>, vector<8x64xf32> -> vector<8x64xf32>
    %cst_60 = arith.constant 0.000000e+00 : f32
    %122 = vector.broadcast %cst_60 : f32 to vector<8x64xf32>
    %123 = arith.maximumf %121, %122 : vector<8x64xf32>
    %c0_61 = arith.constant 0 : index
    %c0_62 = arith.constant 0 : index
    %124 = vector.load %arg6[%c0_61, %c0_62] : memref<64x32xf32, #tpu.memory_space<vmem>>, vector<64x32xf32>
    %cst_63 = arith.constant dense<0.000000e+00> : vector<8x32xf32>
    %125 = tpu.matmul %123, %124, %cst_63 {dimension_numbers = #tpu.dot_dimension_numbers<[1], [0], [0], [1], [0, 0, 1, 1], [], []>} : vector<8x64xf32>, vector<64x32xf32>, vector<8x32xf32> -> vector<8x32xf32>
    %126 = arith.addf %125, %119 : vector<8x32xf32>
    %cst_64 = arith.constant dense<0.000000e+00> : vector<8xf32>
    %127 = vector.multi_reduction <add>, %126, %cst_64 [1] : vector<8x32xf32> to vector<8xf32>
    %128 = vector.shape_cast %127 : vector<8xf32> to vector<8x1xf32>
    %cst_65 = arith.constant 3.200000e+01 : f32
    %129 = vector.broadcast %cst_65 : f32 to vector<8x1xf32>
    %130 = arith.divf %128, %129 : vector<8x1xf32>
    %131 = vector.broadcast %130 : vector<8x1xf32> to vector<8x32xf32>
    %132 = arith.subf %126, %131 : vector<8x32xf32>
    %133 = arith.mulf %132, %132 : vector<8x32xf32>
    %cst_66 = arith.constant dense<0.000000e+00> : vector<8xf32>
    %134 = vector.multi_reduction <add>, %133, %cst_66 [1] : vector<8x32xf32> to vector<8xf32>
    %135 = vector.shape_cast %134 : vector<8xf32> to vector<8x1xf32>
    %cst_67 = arith.constant 3.200000e+01 : f32
    %136 = vector.broadcast %cst_67 : f32 to vector<8x1xf32>
    %137 = arith.divf %135, %136 : vector<8x1xf32>
    %138 = vector.broadcast %130 : vector<8x1xf32> to vector<8x32xf32>
    %139 = arith.subf %126, %138 : vector<8x32xf32>
    %cst_68 = arith.constant 9.99999974E-6 : f32
    %140 = vector.broadcast %cst_68 : f32 to vector<8x1xf32>
    %141 = arith.addf %137, %140 : vector<8x1xf32>
    %142 = math.rsqrt %141 : vector<8x1xf32>
    %143 = vector.broadcast %142 : vector<8x1xf32> to vector<8x32xf32>
    %144 = arith.mulf %139, %143 : vector<8x32xf32>
    %c0_69 = arith.constant 0 : index
    %c0_70 = arith.constant 0 : index
    %c0_71 = arith.constant 0 : index
    %145 = vector.load %arg7[%c0_69, %c0_70, %c0_71] : memref<1x8x32xf32, #tpu.memory_space<vmem>>, vector<1x8x32xf32>
    %146 = vector.shape_cast %145 : vector<1x8x32xf32> to vector<8x32xf32>
    %147 = vector.shape_cast %144 : vector<8x32xf32> to vector<1x8x32xf32>
    tpu.vector_store %arg7[%c0_69, %c0_70, %c0_71], %147 {strides = array<i32>} : memref<1x8x32xf32, #tpu.memory_space<vmem>>, vector<1x8x32xf32>,
    return
  }
  func.func @transform_0(%arg0: i32) -> (i32, i32, i32) {
    %c0_i32 = arith.constant 0 : i32
    %c0_i32_0 = arith.constant 0 : i32
    %c0_i32_1 = arith.constant 0 : i32
    return %arg0, %c0_i32, %c0_i32_0 : i32, i32, i32
  }
  func.func @transform_1(%arg0: i32) -> (i32, i32, i32) {
    %c0_i32 = arith.constant 0 : i32
    %c0_i32_0 = arith.constant 0 : i32
    %c0_i32_1 = arith.constant 0 : i32
    return %arg0, %c0_i32, %c0_i32_0 : i32, i32, i32
  }
  func.func @transform_2(%arg0: i32) -> (i32, i32) {
    %c0_i32 = arith.constant 0 : i32
    %c0_i32_0 = arith.constant 0 : i32
    %c0_i32_1 = arith.constant 0 : i32
    return %c0_i32, %c0_i32_0 : i32, i32
  }
  func.func @transform_3(%arg0: i32) -> (i32, i32) {
    %c0_i32 = arith.constant 0 : i32
    %c0_i32_0 = arith.constant 0 : i32
    %c0_i32_1 = arith.constant 0 : i32
    return %c0_i32, %c0_i32_0 : i32, i32
  }
  func.func @transform_4(%arg0: i32) -> (i32, i32) {
    %c0_i32 = arith.constant 0 : i32
    %c0_i32_0 = arith.constant 0 : i32
    %c0_i32_1 = arith.constant 0 : i32
    return %c0_i32, %c0_i32_0 : i32, i32
  }
  func.func @transform_5(%arg0: i32) -> (i32, i32) {
    %c0_i32 = arith.constant 0 : i32
    %c0_i32_0 = arith.constant 0 : i32
    %c0_i32_1 = arith.constant 0 : i32
    return %c0_i32, %c0_i32_0 : i32, i32
  }
  func.func @transform_6(%arg0: i32) -> (i32, i32, i32) {
    %c0_i32 = arith.constant 0 : i32
    %c0_i32_0 = arith.constant 0 : i32
    %c0_i32_1 = arith.constant 0 : i32
    return %arg0, %c0_i32, %c0_i32_0 : i32, i32, i32
  }
  func.func @transform_7(%arg0: i32) -> (i32, i32, i32, i32) {
    %c0_i32 = arith.constant 0 : i32
    %c0_i32_0 = arith.constant 0 : i32
    %c0_i32_1 = arith.constant 0 : i32
    %c0_i32_2 = arith.constant 0 : i32
    return %arg0, %c0_i32, %c0_i32_0, %c0_i32_1 : i32, i32, i32, i32
  }
}

</mosaic_0001>

<bundles_post_ra>
// kernel: tpu_custom_call.1
= control target key start
LH: loop header
LB: loop body
LE: loop exit
PB: predicated region body
PF: predicated region fallthrough
CT: control target
= control target key end

     0   :  { %s2477_s0 = inlined_call_operand.hbm [shape: f32[2,8,32], index: 0, kind: input, shape index: {}]   ;;  %s2478_s1 = inlined_call_operand.hbm [shape: s32[2,8,8], index: 1, kind: input, shape index: {}]   ;;  %s2479_s2 = inlined_call_operand.vmem [shape: f32[32,96], index: 2, kind: input, shape index: {}]   ;;  %s2480_s3 = inlined_call_operand.vmem [shape: f32[32,32], index: 3, kind: input, shape index: {}]   ;;  %s2481_s4 = inlined_call_operand.vmem [shape: f32[32,64], index: 4, kind: input, shape index: {}]   ;;  %s2482_s5 = inlined_call_operand.vmem [shape: f32[64,32], index: 5, kind: input, shape index: {}]   ;;  %s2483_s6 = inlined_call_operand.hbm [shape: f32[2,8,32], index: 6, kind: output, shape index: {0}]   ;;  %s2484_s7 = inlined_call_operand.hbm [shape: f32[2,4,8,8], index: 7, kind: output, shape index: {1}]  }
   0x1   :  { %2488 = sst [smem:[#allocation15_spill]] %s2477_s0 }
   0x2   :  { %13 = vsyncpa [#allocation4], 0 }
   0x3   :  { %15 = vsyncpa [#allocation4 + $0x1], 0 }
   0x4   :  { %16 = vsyncpa [#allocation7], 0 }
   0x5   :  { %18 = vsyncpa [#allocation7 + $0x1], 0 }
   0x6   :  { %19 = vsyncpa [#allocation5], 0 }
   0x7   :  { %21 = vsyncpa [#allocation5 + $0x1], 0 }
   0x8   :  { %22 = vsyncpa [#allocation10], 0 }
   0x9   :  { %24 = vsyncpa [#allocation10 + $0x1], 0  ;;  %s2065_s24 = smov 0   ;;  %s2067_s25 = smov 0  }
   0xa   :  { %s2069_s26 = smov 0   ;;  %s2071_s27 = smov 0  }
   0xb LB: > { %s2086_s28 = sadd.s32 4294967295, %s2001_s27   ;;  %s1544_s29 = sadd.s32 4294967294, %s2001_s27   ;;  %s2001_s27 = sphi %s2071_s27, %s2507_s27   ;;  %s1997_s26 = sphi %s2069_s26, %s2506_s26   ;;  %s1993_s25 = sphi %s2067_s25, %s2505_s25   ;;  %s1989_s24 = sphi %s2065_s24, %s2504_s24  }
   0xc   : > { %s2090_s30 = sadd.s32 1, %s2001_s27   ;;  %s37_s8 = sadd.s32 1, %s1997_s26 }
   0xd   : > { %s34_s9 = ssub.s32 %s2001_s27, %s2090_s30  ;;  %p44_p0 = scmp.ne.s32.totalorder %s1997_s26, %s1993_s25 }
   0xe   : > { %p35_p1 = scmp.eq.s32.totalorder %s34_s9, 0  ;;  %p45_p2 = scmp.eq.s32.totalorder %s2001_s27, 0 }
   0xf   : > { %p50_p3 = scmp.ne.s32.totalorder %s1993_s25, %s1989_s24  ;;  %p51_p4 = scmp.eq.s32.totalorder %s2086_s28, 0 }
  0x10   : > { %s2102_s10 = scalar_select %p35_p1, %s1997_s26, %s37_s8  }
  0x11   : > { %p2104_p5 = por %p45_p2, %p44_p0  ;;  %p2108_p6 = por %p51_p4, %p50_p3 }
  0x12   : > { %p184_p7 = scmp.eq.s32.totalorder %s2086_s28, 1  ;;  %p190_p8 = scmp.eq.s32.totalorder %s1544_s29, 1 }
  0x13   : > { %s2490_s12 = scalar_select %p2108_p6, 1, 0 }
  0x14   : > { %p1767_p10 = scmp.lt.s32.totalorder %s2001_s27, 2  ;;  %p2115_p11 = por %p184_p7, %p44_p0 }
  0x15   : > { %p2119_p12 = por %p190_p8, %p50_p3  ;;  %s2124_s15 = sand.u32 1, %s1997_s26  }
  0x16   : > { %s2491_s13 = scalar_select %p2115_p11, 1, 0 }
  0x17   : > { %s2492_s14 = scalar_select %p2119_p12, 1, 0 }
  0x18   : > { %s1548_s16 = sshll.u32 %s2001_s27, 7  ;;  %s2485_s17 = sshll.u32 %s2124_s15, 3 }
  0x19   : > { %s2493_s0 = sld [smem:[#allocation15_spill]]  ;;  %s252_s21 = scalar_lea.vmem [#allocation3], %s2485_s17 }
  0x1a   : > { %s259_s22 = sshll.u32 %s252_s21, 4  ;;  %p2139_p13 = pnand %p1767_p10, %p2104_p5  ;;  %s2143_s22 = int_to_ptr.vmem [resolvable:$true] %s259_s22 }
  0x1b   : > { %s249_s29 = scalar_lea.sflag [#allocation4], %s2124_s15 }
  0x1c   : > { %p1841_p3 = pneg %p2139_p13 }
  0x1f   : > { %s2133_s20 = scalar_lea.hbm %s2493_s0, %s1548_s16  ;;  %s1844_s18 = scalar_lea.hbm %s2493_s0, 256 }
  0x20   : > { %s1839_s8 = scalar_lea.hbm %s2133_s20, 128  ;;  %p1845_p5 = scmp.lt.u32.totalorder %s2133_s20, %s2493_s0 }
  0x21   : > { %p1840_p2 = scmp.ne.s32.totalorder %s2133_s20, %s1839_s8  ;;  %p1846_p8 = scmp.lt.u32.totalorder %s1844_s18, %s1839_s8 }
  0x22   : > { %p1848_p9 = scmp.lt.u32.totalorder %s1839_s8, %s2133_s20 }
  0x23   : > { %p1842_p4 = pnand %p1841_p3, %p1840_p2  ;;  %p1847_p10 = por %p1846_p8, %p1845_p5 }
  0x25   : > { %p1843_p7 = pneg %p1842_p4  ;;  %p1849_p0 = por %p1848_p9, %p1847_p10 }
  0x27   : > { %p1850_p1 = pnand %p1849_p0, %p1843_p7 }
  0x29   : > { %1853 = shalt.err (!%p1850_p1)
}
  0x2a   : > { %s1854_s17 = scalar_lea.vmem %s2143_s22, 128  ;;  %s2003_s9 = smov [#allocation3]  }
  0x2b   : > { %p1855_p2 = scmp.ne.s32.totalorder %s2143_s22, %s1854_s17  ;;  %s1859_s11 = sshll.u32 %s2003_s9, 4  ;;  %s1860_s11 = int_to_ptr.vmem [resolvable:$false] %s1859_s11 }
  0x2c   : > { %s1861_s19 = scalar_lea.vmem %s1860_s11, 256  ;;  %p1862_p11 = scmp.lt.s32.totalorder %s2143_s22, %s1860_s11 }
  0x2d   : > { %p1857_p4 = pnand %p1855_p2, %p1841_p3  ;;  %p1863_p5 = scmp.lt.s32.totalorder %s1861_s19, %s1854_s17 }
  0x2f   : > { %p1858_p12 = pneg %p1857_p4  ;;  %p1864_p8 = por %p1863_p5, %p1862_p11 }
  0x31   : > { %p1865_p9 = pnand %p1864_p8, %p1858_p12 }
  0x33   : > { %1868 = shalt.err (!%p1865_p9)
}
  0x34   : > { %1756 = dma.hbm_to_vmem [thread:$0]  (!%p2139_p13), %s2133_s20, 128, %s2143_s22, %s249_s29  }
  0x35   : > { %p2495_p0 = scmp.lt.s32.totalorder %s2001_s27, 3  ;;  %p2496_p1 = scmp.ge.s32.totalorder %s2001_s27, 1 }
  0x36   : > { %s2186_s21 = scalar_lea.hbm %s2478_s1, %s1548_s16  ;;  %s2498_s9 = sshll.u32 %s2124_s15, 3 }
  0x37   : > { %p2177_p7 = pnand %p2496_p1, %p2495_p0  ;;  %s270_s11 = scalar_lea.vmem [#allocation6], %s2498_s9 }
  0x38   : > { %s277_s19 = sshll.u32 %s270_s11, 4  ;;  %s267_s20 = scalar_lea.sflag [#allocation7], %s2124_s15  ;;  %s278_s19 = int_to_ptr.vmem [resolvable:$true] %s277_s19 }
  0x39   : > { %s2497_s8 = scalar_select %p2177_p7, 1, 0 }
  0x3a   : > { %s1869_s22 = scalar_lea.hbm %s2186_s21, 128  ;;  %s1874_s16 = scalar_lea.hbm %s2478_s1, 256 }
  0x3b   : > { %p1870_p11 = scmp.ne.s32.totalorder %s2186_s21, %s1869_s22  ;;  %p1875_p2 = scmp.lt.u32.totalorder %s2186_s21, %s2478_s1 }
  0x3c   : > { %p1876_p4 = scmp.lt.u32.totalorder %s1874_s16, %s1869_s22  ;;  %p1878_p8 = scmp.lt.u32.totalorder %s1869_s22, %s2186_s21 }
  0x3d   : > { %p1872_p12 = pnand %p1870_p11, %p1841_p3 }
  0x3e   : > { %p1877_p5 = por %p1876_p4, %p1875_p2 }
  0x3f   : > { %p1873_p10 = pneg %p1872_p12 }
  0x40   : > { %p1879_p9 = por %p1878_p8, %p1877_p5 }
  0x42   : > { %p1880_p0 = pnand %p1879_p9, %p1873_p10 }
  0x44   : > { %1883 = shalt.err (!%p1880_p0)
}
  0x45   : > { %s1884_s15 = scalar_lea.vmem %s278_s19, 128  ;;  %s2004_s9 = smov [#allocation6]  }
  0x46   : > { %p1885_p1 = scmp.ne.s32.totalorder %s278_s19, %s1884_s15  ;;  %s1889_s0 = sshll.u32 %s2004_s9, 4  ;;  %s1890_s0 = int_to_ptr.vmem [resolvable:$false] %s1889_s0 }
  0x47   : > { %s1891_s11 = scalar_lea.vmem %s1890_s0, 256  ;;  %p1892_p6 = scmp.lt.s32.totalorder %s278_s19, %s1890_s0 }
  0x48   : > { %p1887_p11 = pnand %p1885_p1, %p1841_p3  ;;  %p1893_p7 = scmp.lt.s32.totalorder %s1891_s11, %s1884_s15 }
  0x4a   : > { %p1888_p12 = pneg %p1887_p11  ;;  %p1894_p2 = por %p1893_p7, %p1892_p6 }
  0x4c   : > { %p1895_p4 = pnand %p1894_p2, %p1888_p12 }
  0x4e   : > { %1898 = shalt.err (!%p1895_p4)
}
  0x4f   : > { %1759 = dma.hbm_to_vmem [thread:$0]  (!%p2139_p13), %s2186_s21, 128, %s278_s19, %s267_s20  }
  0x50   : > { %p2499_p10 = scmp.ne.s32.totalorder %s2497_s8, 0 }
  0x51   : > { %s2213_s22 = sand.u32 (!%p2499_p10), 1, %s1993_s25   ;;  %p2500_p6 = scmp.ne.s32.totalorder (!%p2499_p10), %s2490_s12, 0 }
  0x52   : > { %286 = sbr.rel (%p2499_p10) target bundleno = 2628 (0xa44), region = 44  ;;  %s2216_s29 = sshll.u32 (!%p2499_p10), %s2213_s22, 3 }
  0x53   : > { %s289_s16 = scalar_lea.sflag (!%p2499_p10), [#allocation4], %s2213_s22  ;;  %s292_s17 = scalar_lea.vmem (!%p2499_p10), [#allocation3], %s2216_s29 }
  0x59   : > { %1972 = dma.done.wait (%p2500_p6), %s289_s16, 128  }
  0x5a   : > { %1974 = vsyncadd (%p2500_p6), %s289_s16, 4294967168  ;;  %s298_s23 = scalar_lea.sflag [#allocation7], %s2213_s22  ;;  %s301_s8 = scalar_lea.vmem [#allocation6], %s2216_s29 }
  0x5b   : > { %1976 = dma.done.wait (%p2500_p6), %s298_s23, 128  }
  0x5c   : > { %1978 = vsyncadd (%p2500_p6), %s298_s23, 4294967168  ;;  %v2005_v0 = vmov 0.0|0.0   ;;  %vm2006_vm0 = vmmov 0   ;;  %v2007_v1 = vmov 0.0   ;;  %v343_v2 = vld [vmem:[%s2479_s2] sm:$0xff]  ;;  %v344_v3 = vld [vmem:[%s2479_s2 + $0x8] sm:$0xff] }
  0x5d   : > { %1715 = vmatprep.subr.bf16.mxu1 %v2005_v0  ;;  %1631 = vmatprep.mubr.msk.f32.mxu1 %vm2006_vm0, %v2007_v1  ;;  %v345_v4 = vld [vmem:[%s2479_s2 + $0x10] sm:$0xff]  ;;  %v1716_v5 = vpack.c.bf16 %v344_v3, %v343_v2  ;;  %v346_v6 = vld [vmem:[%s2479_s2 + $0x18] sm:$0xff]  ;;  %vm347_vm1 = vcmask 261120   ;;  %s2008_s11 = smov 120   ;;  %s2009_s16 = smov 96   ;;  %vm427_vm2 = vcmask 64512  }
  0x5e   : > { %1644 = vmatprep.subr.mxu0 %v2007_v1  ;;  %1646 = vmatprep.mubr.msk.f32.mxu0 %vm2006_vm0, %v2007_v1  ;;  %v1719_v7 = vpack.c.bf16 %v346_v6, %v345_v4  ;;  %v2249_v8 = vld [vmem:[%s292_s17] sm:$0xff]  ;;  %s2010_s17 = smov 80   ;;  %s2011_s23 = smov 88   ;;  %v421_v18 = vld [vmem:[%s301_s8] sm:$0xff]  ;;  %vm766_vm4 = vcmask 130112   ;;  %vm941_vm5 = vcmask 195712  }
  0x5f   : > { %1717 = vmatpush3.bf16.msra.mxu1 %v1716_v5  ;;  %s2012_s21 = smov 72   ;;  %s2013_s19 = smov 112   ;;  %vm422_vm3 = vcmp.ne.s32.totalorder %v421_v18, 0  ;;  %vm1116_vm6 = vcmask 261312   ;;  %vm1296_vm7 = vcmask 523264  }
  0x60   : > { %1718 = vmatprep.subr.bf16.mxu1 %v2005_v0  ;;  %s2014_s20 = smov 104   ;;  %v423_v20 = vsel %vm422_vm3, -1e+09, %v2007_v1  ;;  %s2015_s8 = smov 56  }
  0x61   : > { %s2016_s12 = smov 64   ;;  %s2017_s18 = smov 48  }
  0x62   : > { %s2018_s15 = smov 40   ;;  %s1555_s9 = sshll.u32 %s2213_s22, 5 }
  0x63   : > { %1720 = vmatpush3.bf16.msra.mxu1 %v1719_v7  ;;  %s2303_s0 = scalar_lea.vmem [#allocation9], %s1555_s9  ;;  %p2501_p3 = scmp.ne.s32.totalorder %s2491_s13, 0 }
  0x64   : > { %1634 = vmatprep.subr.mxu1 %v2007_v1 }
  0x66   : > { %1632 = vmatmul.mubr.msk.f32.vlgmr.msra.gmra.mrb[0].mxu1 %vm347_vm1, %v2249_v8 }
  0x67   : > { %1636 = vmatprep.mubr.msk.f32.mxu1 %vm2006_vm0, %v2007_v1 }
 0x139   : > { %v2256_v9 = vpop.f32.mrb[0].mxu1 }
 0x13a   : > { %593 = vrot.lane.b32.xlu1 %v2256_v9, %s2008_s11  ;;  %425 = vrot.lane.b32.xlu0 %v2256_v9, %s2009_s16  ;;  %v1633_v10 = vpop.f32.mrb[1].mxu1  ;;  %s2019_s11 = smov 8  }
 0x13e   : > { %770 = vrot.lane.b32.xlu1 %v2256_v9, %s2010_s17  ;;  %595 = vrot.lane.b32.xlu0 %v2256_v9, %s2011_s23  ;;  %s1582_s17 = sshll.u32 %s2086_s28, 9  ;;  %s1416_s23 = sshll.u32 %s2303_s0, 4  ;;  %s2400_s23 = int_to_ptr.vmem [resolvable:$true] %s1416_s23 }
 0x142   : > { %945 = vrot.lane.b32.xlu1 %v2256_v9, %s2012_s21  ;;  %768 = vrot.lane.b32.xlu0 %v2256_v9, %s2013_s19 }
 0x146   : > { %943 = vrot.lane.b32.xlu0 %v2256_v9, %s2014_s20  ;;  %s2398_s20 = scalar_lea.hbm %s2484_s7, %s1582_s17 }
 0x1ac   : > { %v594_v11 = vpop.permute.xlu1 %593  ;;  %v426_v12 = vpop.permute.xlu0 %425 }
 0x1ad   : > { %1635 = vmatpush3.xpose.msk.msra.mxu1 %vm427_vm2, %v426_v12 }
 0x1ae   : > { %1639 = vmatprep.subr.mxu1 %v2007_v1 }
 0x1b0   : > { %1637 = vmatmul.mubr.msk.f32.vlgmr.msra.gmra.mrb[2].mxu1 %vm427_vm2, %v2256_v9  ;;  %v596_v13 = vpop.permute.xlu0 %595  ;;  %v771_v14 = vpop.permute.xlu1 %770 }
 0x1b1   : > { %1645 = vmatpush3.xpose.msk.msra.mxu0 %vm427_vm2, %v596_v13  ;;  %1641 = vmatprep.mubr.msk.f32.mxu1 %vm2006_vm0, %v2007_v1 }
 0x1b2   : > { %1654 = vmatprep.subr.mxu0 %v2007_v1 }
 0x1b4   : > { %1647 = vmatmul.mubr.msk.f32.vlgmr.msra.gmra.mrb[0].mxu0 %vm427_vm2, %v594_v11  ;;  %v769_v15 = vpop.permute.xlu0 %768  ;;  %v946_v16 = vpop.permute.xlu1 %945 }
 0x1b5   : > { %1655 = vmatpush3.xpose.msk.msra.mxu0 %vm427_vm2, %v771_v14  ;;  %1656 = vmatprep.mubr.msk.f32.mxu0 %vm2006_vm0, %v2007_v1 }
 0x1b6   : > { %1664 = vmatprep.subr.mxu0 %v2007_v1 }
 0x1b8   : > { %1657 = vmatmul.mubr.msk.f32.vlgmr.msra.gmra.mrb[2].mxu0 %vm427_vm2, %v769_v15  ;;  %v944_v17 = vpop.permute.xlu0 %943 }
 0x1b9   : > { %1665 = vmatpush3.xpose.msk.msra.mxu0 %vm427_vm2, %v946_v16  ;;  %1666 = vmatprep.mubr.msk.f32.mxu0 %vm2006_vm0, %v2007_v1 }
 0x1ba   : > { %1721 = vmatprep.subr.bf16.mxu0 %v2005_v0 }
 0x1bc   : > { %1667 = vmatmul.mubr.msk.f32.vlgmr.msra.gmra.mrb[4].mxu0 %vm427_vm2, %v944_v17 }
 0x1bd   : > { %1682 = vmatprep.mubr.msk.f32.mxu0 %vm2006_vm0, %v2007_v1 }
 0x283   : > { %v498_v19 = vpop.f32.mrb[2].mxu1 }
 0x284   : > { %v502_v21 = vmul.f32 0.35355338, %v498_v19  ;;  %v1638_v22 = vpop.f32.mrb[3].mxu1  ;;  %v1119_v19 = vld [vmem:[%s2480_s3] sm:$0xff] }
 0x285   : > { %v1121_v22 = vld [vmem:[%s2480_s3 + $0x10] sm:$0xff] }
 0x286   : > { %v503_v23 = vadd.f32 %v502_v21, %v423_v20 }
 0x287   : > { %v667_v24 = vpop.f32.mrb[0].mxu0 }
 0x288   : > { %v671_v25 = vmul.f32 0.35355338, %v667_v24  ;;  %v1648_v26 = vpop.f32.mrb[1].mxu0  ;;  %v504_v27 = vsel %vm427_vm2, %v503_v23, -inf }
 0x289   : > { %505 = vmax.xlane.f32.xlu1 %v504_v27 }
 0x28a   : > { %v672_v28 = vadd.f32 %v671_v25, %v423_v20 }
 0x28b   : > { %v842_v29 = vpop.f32.mrb[2].mxu0 }
 0x28c   : > { %v846_v30 = vmul.f32 0.35355338, %v842_v29  ;;  %v1658_v31 = vpop.f32.mrb[3].mxu0  ;;  %v673_v32 = vsel %vm427_vm2, %v672_v28, -inf }
 0x28d   : > { %674 = vmax.xlane.f32.xlu0 %v673_v32 }
 0x28e   : > { %v847_v33 = vadd.f32 %v846_v30, %v423_v20 }
 0x28f   : > { %v1017_v34 = vpop.f32.mrb[4].mxu0 }
 0x290   : > { %v1021_v35 = vmul.f32 0.35355338, %v1017_v34  ;;  %v1668_v36 = vpop.f32.mrb[5].mxu0  ;;  %v848_v37 = vsel %vm427_vm2, %v847_v33, -inf }
 0x291   : > { %849 = vmax.xlane.f32.xlu0 %v848_v37 }
 0x292   : > { %v1022_v38 = vadd.f32 %v1021_v35, %v423_v20  ;;  %v1120_v20 = vld [vmem:[%s2480_s3 + $0x8] sm:$0xff] }
 0x293   : > { %v1722_v21 = vpack.c.bf16 %v1120_v20, %v1119_v19 }
 0x294   : > { %v1023_v39 = vsel %vm427_vm2, %v1022_v38, -inf }
 0x295   : > { %1024 = vmax.xlane.f32.xlu1 %v1023_v39  ;;  %1723 = vmatpush3.bf16.msra.mxu0 %v1722_v21 }
 0x296   : > { %1724 = vmatprep.subr.bf16.mxu0 %v2005_v0 }
 0x2a6   : > { %686 = vrot.lane.b32.xlu1 %v2256_v9, %s2015_s8  ;;  %s1390_s8 = scalar_lea.sflag [#allocation10], %s2213_s22 }
 0x316   : > { %v506_v40 = vpop.xlane.xlu1 %505 }
 0x317   : > { %v507_v41 = vsub.f32 %v503_v23, %v506_v40  ;;  %v1122_v23 = vld [vmem:[%s2480_s3 + $0x18] sm:$0xff] }
 0x318   : > { %v1725_v24 = vpack.c.bf16 %v1122_v23, %v1121_v22 }
 0x319   : > { %v508_v42 = vmul.f32 1.442695, %v507_v41 }
 0x31a   : > { %v675_v43 = vpop.xlane.xlu0 %674  ;;  %1726 = vmatpush3.bf16.msra.mxu0 %v1725_v24 }
 0x31b   : > { %1819 = vpow2.f32 %v508_v42  ;;  %v676_v44 = vsub.f32 %v672_v28, %v675_v43  ;;  %1733 = vmatprep.subr.bf16.mxu0 %v2005_v0  ;;  %v1210_v42 = vld [vmem:[%s2481_s4] sm:$0xff]  ;;  %v1212_v43 = vld [vmem:[%s2481_s4 + $0x10] sm:$0xff] }
 0x31d   : > { %v677_v45 = vmul.f32 1.442695, %v676_v44  ;;  %v1213_v44 = vld [vmem:[%s2481_s4 + $0x18] sm:$0xff] }
 0x31e   : > { %v850_v55 = vpop.xlane.xlu0 %849 }
 0x31f   : > { %1821 = vpow2.f32 %v677_v45  ;;  %v851_v56 = vsub.f32 %v847_v33, %v850_v55  ;;  %v1731_v45 = vpack.c.bf16 %v1213_v44, %v1212_v43 }
 0x321   : > { %v852_v57 = vmul.f32 1.442695, %v851_v56 }
 0x322   : > { %v1025_v46 = vpop.xlane.xlu1 %1024 }
 0x323   : > { %v1026_v47 = vsub.f32 %v1022_v38, %v1025_v46  ;;  %v1288_v46 = vld [vmem:[%s2482_s5] sm:$0xff] }
 0x325   : > { %v1820_v48 = vpop.eup %1819  ;;  %v1027_v49 = vmul.f32 1.442695, %v1026_v47  ;;  %v1289_v47 = vld [vmem:[%s2482_s5 + $0x8] sm:$0xff] }
 0x326   : > { %v510_v50 = vsel %vm427_vm2, %v1820_v48, 0.0  ;;  %v687_v60 = vpop.permute.xlu1 %686 }
 0x327   : > { %1823 = vpow2.f32 %v1027_v49  ;;  %511 = vadd.xlane.f32.xlu0 %v510_v50  ;;  %v1734_v49 = vpack.c.bf16 %v1289_v47, %v1288_v46  ;;  %v1291_v50 = vld [vmem:[%s2482_s5 + $0x18] sm:$0xff] }
 0x328   : > { %1825 = vpow2.f32 %v852_v57 }
 0x329   : > { %v1822_v51 = vpop.eup %1821 }
 0x32a   : > { %v679_v52 = vsel %vm427_vm2, %v1822_v51, 0.0 }
 0x32b   : > { %680 = vadd.xlane.f32.xlu1 %v679_v52  ;;  %v1292_v52 = vld [vmem:[%s2482_s5 + $0x20] sm:$0xff] }
 0x331   : > { %v1824_v53 = vpop.eup %1823 }
 0x332   : > { %v1029_v54 = vsel %vm427_vm2, %v1824_v53, 0.0  ;;  %v1826_v58 = vpop.eup %1825 }
 0x333   : > { %1030 = vadd.xlane.f32.xlu1 %v1029_v54  ;;  %v854_v59 = vsel %vm427_vm2, %v1826_v58, 0.0 }
 0x33d   : > { %516 = vrot.lane.b32.xlu0 %v2256_v9, %s2016_s12  ;;  %s1899_s12 = scalar_lea.vmem %s2400_s23, 512 }
 0x33e   : > { %p1900_p13 = scmp.ne.s32.totalorder %s2400_s23, %s1899_s12 }
 0x340   : > { %p1901_p7 = pnand %p1900_p13, %p2501_p3 }
 0x342   : > { %p1902_p5 = pneg %p1901_p7 }
 0x344   : > { %861 = vrot.lane.b32.xlu1 %v2256_v9, %s2017_s18  ;;  %s2020_s18 = smov 16  }
 0x35c   : > { %855 = vadd.xlane.f32.xlu0 %v854_v59 }
 0x372   : > { %1036 = vrot.lane.b32.xlu0 %v2256_v9, %s2018_s15  ;;  %s2021_s15 = smov 24  }
 0x3b4   : > { %v512_v61 = vpop.xlane.xlu0 %511 }
 0x3b5   : > { %1827 = vrcp.f32 %v512_v61  ;;  %v1295_v61 = vld [vmem:[%s2482_s5 + $0x38] sm:$0xff] }
 0x3b8   : > { %v517_v62 = vpop.permute.xlu0 %516  ;;  %v681_v63 = vpop.xlane.xlu1 %680 }
 0x3b9   : > { %1829 = vrcp.f32 %v681_v63  ;;  %1640 = vmatpush3.msra.mxu1 %v517_v62 }
 0x3ba   : > { %1649 = vmatprep.subr.mxu1 %v2007_v1 }
 0x3bf   : > { %v1828_v2 = vpop.eup %1827 }
 0x3c0   : > { %v514_v3 = vmul.f32 %v1828_v2, %v1820_v48  ;;  %v1031_v4 = vpop.xlane.xlu1 %1030  ;;  %v1290_v48 = vld [vmem:[%s2482_s5 + $0x10] sm:$0xff] }
 0x3c1   : > { %1831 = vrcp.f32 %v1031_v4 }
 0x3c2   : > { %515 = vst.msk [vmem:[%s2303_s0] sm:$0xff] %vm427_vm2, %v514_v3  ;;  %1642 = vmatmul.mubr.msk.f32.vlgmr.msra.gmra.mrb[4].mxu1 %vm427_vm2, %v514_v3 }
 0x3c3   : > { %v1830_v5 = vpop.eup %1829  ;;  %1650 = vmatpush3.msra.mxu1 %v687_v60  ;;  %1651 = vmatprep.mubr.msk.f32.mxu1 %vm2006_vm0, %v2007_v1  ;;  %v1294_v60 = vld [vmem:[%s2482_s5 + $0x30] sm:$0xff] }
 0x3c4   : > { %v683_v6 = vmul.f32 %v1830_v5, %v1822_v51  ;;  %v862_v7 = vpop.permute.xlu1 %861  ;;  %1659 = vmatprep.subr.mxu1 %v2007_v1  ;;  %v1737_v51 = vpack.c.bf16 %v1291_v50, %v1290_v48  ;;  %v1743_v62 = vpack.c.bf16 %v1295_v61, %v1294_v60 }
 0x3c6   : > { %1562 = vst.msk [vmem:[%s2303_s0 + $0x8] sm:$0xff] %vm427_vm2, %v683_v6  ;;  %1652 = vmatmul.mubr.msk.f32.vlgmr.msra.gmra.mrb[6].mxu1 %vm427_vm2, %v683_v6 }
 0x3c7   : > { %1660 = vmatpush3.msra.mxu1 %v862_v7  ;;  %1661 = vmatprep.mubr.msk.f32.mxu1 %vm2006_vm0, %v2007_v1 }
 0x3c8   : > { %1669 = vmatprep.subr.mxu1 %v2007_v1 }
 0x3cb   : > { %v1832_v9 = vpop.eup %1831 }
 0x3cc   : > { %v1033_v10 = vmul.f32 %v1832_v9, %v1824_v53  ;;  %v1293_v53 = vld [vmem:[%s2482_s5 + $0x28] sm:$0xff] }
 0x3cd   : > { %v1740_v54 = vpack.c.bf16 %v1293_v53, %v1292_v52 }
 0x3ce   : > { %1570 = vst.msk [vmem:[%s2303_s0 + $0x18] sm:$0xff] %vm427_vm2, %v1033_v10 }
 0x3e9   : > { %v856_v11 = vpop.xlane.xlu0 %855 }
 0x3ea   : > { %1833 = vrcp.f32 %v856_v11 }
 0x3ed   : > { %v1037_v14 = vpop.permute.xlu0 %1036 }
 0x3f4   : > { %v1834_v12 = vpop.eup %1833 }
 0x3f5   : > { %v858_v13 = vmul.f32 %v1834_v12, %v1826_v58 }
 0x3f7   : > { %1566 = vst.msk [vmem:[%s2303_s0 + $0x10] sm:$0xff] %vm427_vm2, %v858_v13  ;;  %1662 = vmatmul.mubr.msk.f32.vlgmr.msra.gmra.mrb[8].mxu1 %vm427_vm2, %v858_v13 }
 0x3f8   : > { %1670 = vmatpush3.msra.mxu1 %v1037_v14  ;;  %1671 = vmatprep.mubr.msk.f32.mxu1 %vm2006_vm0, %v2007_v1 }
 0x3f9   : > { %1727 = vmatprep.subr.bf16.mxu1 %v2005_v0 }
 0x3fb   : > { %1672 = vmatmul.mubr.msk.f32.vlgmr.msra.gmra.mrb[10].mxu1 %vm427_vm2, %v1033_v10 }
 0x3fc   : > { %1693 = vmatprep.mubr.msk.f32.mxu1 %vm2006_vm0, %v2007_v1 }
 0x495   : > { %v588_v15 = vpop.f32.mrb[4].mxu1 }
 0x496   : > { %592 = vst.msk [vmem:[#allocation2] sm:$0xff] %vm427_vm2, %v588_v15  ;;  %v1643_v16 = vpop.f32.mrb[5].mxu1 }
 0x499   : > { %v758_v17 = vpop.f32.mrb[6].mxu1 }
 0x49a   : > { %763 = vrot.lane.b32.xlu1 %v758_v17, %s2019_s11  ;;  %v1653_v18 = vpop.f32.mrb[7].mxu1 }
 0x4ca   : > { %v933_v25 = vpop.f32.mrb[8].mxu1 }
 0x4cb   : > { %938 = vrot.lane.b32.xlu0 %v933_v25, %s2020_s18  ;;  %v1663_v26 = vpop.f32.mrb[9].mxu1  ;;  %s2022_s18 = smov [#allocation9]  }
 0x4ce   : > { %v1108_v27 = vpop.f32.mrb[10].mxu1 }
 0x4cf   : > { %1113 = vrot.lane.b32.xlu1 %v1108_v27, %s2021_s15  ;;  %v1673_v28 = vpop.f32.mrb[11].mxu1  ;;  %s1903_s15 = sshll.u32 %s2022_s18, 4  ;;  %s1904_s15 = int_to_ptr.vmem [resolvable:$false] %s1903_s15 }
 0x4d0   : > { %s1905_s0 = scalar_lea.vmem %s1904_s15, 1024  ;;  %p1906_p8 = scmp.lt.s32.totalorder %s2400_s23, %s1904_s15 }
 0x4d1   : > { %p1907_p9 = scmp.lt.s32.totalorder %s1905_s0, %s1899_s12 }
 0x4d3   : > { %p1908_p0 = por %p1907_p9, %p1906_p8 }
 0x4d5   : > { %p1909_p1 = pnand %p1908_p0, %p1902_p5 }
 0x50c   : > { %v764_v29 = vpop.permute.xlu1 %763 }
 0x50d   : > { %767 = vst.msk [vmem:[#allocation2] sm:$0xff] %vm766_vm4, %v764_v29 }
 0x53d   : > { %v939_v30 = vpop.permute.xlu0 %938 }
 0x53e   : > { %942 = vst.msk [vmem:[#allocation2] sm:$0xff] %vm941_vm5, %v939_v30 }
 0x541   : > { %v1114_v31 = vpop.permute.xlu1 %1113 }
 0x542   : > { %1117 = vst.msk [vmem:[#allocation2] sm:$0xff] %vm1116_vm6, %v1114_v31 }
 0x549   : > { %v1118_v32 = vld [vmem:[#allocation2] sm:$0xff] }
 0x54a   : > { %1683 = vmatmul.mubr.msk.f32.vlgmr.msra.gmra.mrb[6].mxu0 %vm347_vm1, %v1118_v32 }
 0x54b   : > { %1712 = vmatprep.mubr.msk.f32.mxu0 %vm2006_vm0, %v2007_v1  ;;  %v1211_v1 = vld [vmem:[%s2481_s4 + $0x8] sm:$0xff]  ;;  %1735 = vmatpush3.bf16.msra.mxu0 %v1734_v49 }
 0x54c   : > { %1736 = vmatprep.subr.bf16.mxu0 %v2005_v0 }
 0x54f   : > { %1738 = vmatpush3.bf16.msra.mxu0 %v1737_v51 }
 0x550   : > { %1739 = vmatprep.subr.bf16.mxu0 %v2005_v0 }
 0x553   : > { %1741 = vmatpush3.bf16.msra.mxu0 %v1740_v54 }
 0x554   : > { %1742 = vmatprep.subr.bf16.mxu0 %v2005_v0 }
 0x557   : > { %1744 = vmatpush3.bf16.msra.mxu0 %v1743_v62 }
 0x61d   : > { %v1192_v33 = vpop.f32.mrb[6].mxu0 }
 0x61e   : > { %v1193_v34 = vadd.f32 %v1192_v33, %v2249_v8  ;;  %v1684_v35 = vpop.f32.mrb[7].mxu0  ;;  %v1728_v8 = vpack.c.bf16 %v1211_v1, %v1210_v42 }
 0x620   : > { %v1196_v36 = vsel %vm347_vm1, %v1193_v34, 0.0  ;;  %1729 = vmatpush3.bf16.msra.mxu1 %v1728_v8 }
 0x621   : > { %1197 = vadd.xlane.f32.xlu0 %v1196_v36  ;;  %1730 = vmatprep.subr.bf16.mxu1 %v2005_v0 }
 0x624   : > { %1732 = vmatpush3.bf16.msra.mxu1 %v1731_v45 }
 0x6ae   : > { %v1198_v37 = vpop.xlane.xlu0 %1197 }
 0x6af   : > { %v1200_v38 = vmul.f32 0.03125, %v1198_v37 }
 0x6b1   : > { %v1201_v39 = vsub.f32 %v1193_v34, %v1200_v38 }
 0x6b3   : > { %v1202_v40 = vmul.f32 %v1201_v39, %v1201_v39 }
 0x6b5   : > { %v1203_v41 = vsel %vm347_vm1, %v1202_v40, 0.0 }
 0x6b6   : > { %1204 = vadd.xlane.f32.xlu1 %v1203_v41 }
 0x743   : > { %v1205_v55 = vpop.xlane.xlu1 %1204 }
 0x744   : > { %v1206_v56 = vmul.f32 0.03125, %v1205_v55 }
 0x746   : > { %v1207_v57 = vadd.f32 1e-05, %v1206_v56 }
 0x748   : > { %1835 = vrsqrt.f32 %v1207_v57 }
 0x752   : > { %v1836_v58 = vpop.eup %1835 }
 0x753   : > { %v1209_v59 = vmul.f32 %v1836_v58, %v1201_v39 }
 0x755   : > { %1694 = vmatmul.mubr.msk.f32.vlgmr.msra.gmra.mrb[12].mxu1 %vm347_vm1, %v1209_v59 }
 0x828   : > { %v1283_v63 = vpop.f32.mrb[12].mxu1 }
 0x829   : > { %v1287_v0 = vmax.f32 %v1283_v63, 0.0  ;;  %v1695_v2 = vpop.f32.mrb[13].mxu1 }
 0x82b   : > { %1713 = vmatmul.mubr.msk.f32.vlgmr.msra.gmra.mrb[8].mxu0 %vm1296_vm7, %v1287_v0 }
 0x8fe   : > { %v1366_v3 = vpop.f32.mrb[8].mxu0 }
 0x8ff   : > { %v1367_v4 = vadd.f32 %v1366_v3, %v1209_v59  ;;  %v1714_v5 = vpop.f32.mrb[9].mxu0 }
 0x901   : > { %v1370_v6 = vsel %vm347_vm1, %v1367_v4, 0.0 }
 0x902   : > { %1371 = vadd.xlane.f32.xlu0 %v1370_v6 }
 0x98f   : > { %v1372_v7 = vpop.xlane.xlu0 %1371 }
 0x990   : > { %v1373_v9 = vmul.f32 0.03125, %v1372_v7 }
 0x992   : > { %v1374_v10 = vsub.f32 %v1367_v4, %v1373_v9 }
 0x994   : > { %v1375_v11 = vmul.f32 %v1374_v10, %v1374_v10 }
 0x996   : > { %v1376_v12 = vsel %vm347_vm1, %v1375_v11, 0.0 }
 0x997   : > { %1377 = vadd.xlane.f32.xlu0 %v1376_v12 }
 0x998   : > { %1912 = shalt.err (!%p1909_p1)
}
 0x999   : > { %s1913_s9 = scalar_lea.hbm %s2398_s20, 512  ;;  %s1917_s21 = scalar_lea.hbm %s2484_s7, 1024 }
 0x99a   : > { %p1914_p11 = scmp.ne.s32.totalorder %s2398_s20, %s1913_s9  ;;  %p1918_p4 = scmp.lt.u32.totalorder %s2398_s20, %s2484_s7 }
 0x99b   : > { %p1919_p10 = scmp.lt.u32.totalorder %s1917_s21, %s1913_s9  ;;  %p1921_p13 = scmp.lt.u32.totalorder %s1913_s9, %s2398_s20 }
 0x99c   : > { %p1915_p12 = pnand %p1914_p11, %p2501_p3 }
 0x99d   : > { %p1920_p6 = por %p1919_p10, %p1918_p4 }
 0x99e   : > { %p1916_p2 = pneg %p1915_p12 }
 0x99f   : > { %p1922_p7 = por %p1921_p13, %p1920_p6 }
 0x9a1   : > { %p1923_p5 = pnand %p1922_p7, %p1916_p2 }
 0x9a3   : > { %1926 = shalt.err (!%p1923_p5)
}
 0x9a4   : > { %s2023_s12 = smov 128   ;;  %s1577_s15 = sshll.u32 %s2086_s28, 7 }
 0x9a5   : > { %1750 = dma.vmem_to_hbm [thread:$0]  (%p2501_p3), %s2400_s23, 512, %s2398_s20, %s1390_s8, %s2023_s12, %s2023_s12, %s2019_s11  }
 0x9a6   : > { %s334_s0 = scalar_lea.vmem [#allocation8], %s2216_s29  ;;  %s2432_s21 = scalar_lea.hbm %s2483_s6, %s1577_s15 }
 0x9a7   : > { %s1403_s9 = sshll.u32 %s334_s0, 4  ;;  %s1385_s11 = scalar_lea.sflag [#allocation5], %s2213_s22  ;;  %s2434_s9 = int_to_ptr.vmem [resolvable:$true] %s1403_s9 }
 0x9a8   : > { %s1927_s23 = scalar_lea.vmem %s2434_s9, 128  ;;  %s2024_s28 = smov [#allocation8]  }
 0x9a9   : > { %p1928_p8 = scmp.ne.s32.totalorder %s2434_s9, %s1927_s23  ;;  %s1931_s29 = sshll.u32 %s2024_s28, 4  ;;  %s1932_s29 = int_to_ptr.vmem [resolvable:$false] %s1931_s29 }
 0x9aa   : > { %s1933_s20 = scalar_lea.vmem %s1932_s29, 256  ;;  %p1934_p1 = scmp.lt.s32.totalorder %s2434_s9, %s1932_s29 }
 0x9ab   : > { %p1929_p9 = pnand %p1928_p8, %p2501_p3  ;;  %p1935_p11 = scmp.lt.s32.totalorder %s1933_s20, %s1927_s23 }
 0x9ad   : > { %p1930_p0 = pneg %p1929_p9  ;;  %p1936_p12 = por %p1935_p11, %p1934_p1 }
 0x9af   : > { %p1937_p2 = pnand %p1936_p12, %p1930_p0 }
 0xa24   : > { %v1378_v13 = vpop.xlane.xlu0 %1377 }
 0xa25   : > { %v1379_v14 = vmul.f32 0.03125, %v1378_v13 }
 0xa27   : > { %v1380_v15 = vadd.f32 1e-05, %v1379_v14 }
 0xa29   : > { %1837 = vrsqrt.f32 %v1380_v15 }
 0xa33   : > { %v1838_v16 = vpop.eup %1837 }
 0xa34   : > { %v1382_v17 = vmul.f32 %v1838_v16, %v1374_v10 }
 0xa36   : > { %1383 = vst.msk [vmem:[%s334_s0] sm:$0xff] %vm347_vm1, %v1382_v17 }
 0xa37   : > { %1940 = shalt.err (!%p1937_p2)
}
 0xa38   : > { %s1941_s22 = scalar_lea.hbm %s2432_s21, 128  ;;  %s1945_s18 = scalar_lea.hbm %s2483_s6, 256 }
 0xa39   : > { %p1942_p4 = scmp.ne.s32.totalorder %s2432_s21, %s1941_s22  ;;  %p1946_p13 = scmp.lt.u32.totalorder %s2432_s21, %s2483_s6 }
 0xa3a   : > { %p1947_p7 = scmp.lt.u32.totalorder %s1945_s18, %s1941_s22  ;;  %p1949_p8 = scmp.lt.u32.totalorder %s1941_s22, %s2432_s21 }
 0xa3b   : > { %p1943_p10 = pnand %p1942_p4, %p2501_p3 }
 0xa3c   : > { %p1948_p5 = por %p1947_p7, %p1946_p13 }
 0xa3d   : > { %p1944_p6 = pneg %p1943_p10 }
 0xa3e   : > { %p1950_p9 = por %p1949_p8, %p1948_p5 }
 0xa40   : > { %p1951_p0 = pnand %p1950_p9, %p1944_p6 }
 0xa42   : > { %1954 = shalt.err (!%p1951_p0)
}
 0xa43   : > { %1749 = dma.vmem_to_hbm [thread:$0]  (%p2501_p3), %s2434_s9, 128, %s2432_s21, %s1385_s11  }
 0xa44 PF: > { %s1431_s0 = sand.u32 1, %s1989_s24   ;;  %p2502_p1 = scmp.ne.s32.totalorder %s2492_s14, 0 }
 0xa45   : > { %p2503_p11 = scmp.ge.s32.totalorder %s2001_s27, 2  ;;  %s1432_s16 = scalar_lea.sflag [#allocation5], %s1431_s0 }
 0xa47   : > { %p1761_p12 = pnand %p2503_p11, %p2502_p1 }
 0xa49   : > { %1980 = dma.done.wait (!%p1761_p12), %s1432_s16, 128  }
 0xa4a   : > { %1982 = vsyncadd (!%p1761_p12), %s1432_s16, 4294967168  ;;  %s1441_s17 = scalar_lea.sflag [#allocation10], %s1431_s0 }
 0xa4b   : > { %1984 = dma.done.wait (!%p1761_p12), %s1441_s17, 512  }
 0xa4c   : > { %1986 = vsyncadd (!%p1761_p12), %s1441_s17, 4294966784  ;;  %p27_p3 = scmp.ge.s32.totalorder %s2090_s30, 4   ;;  %s2504_s24 = smov %s1993_s25 }
 0xa4d   : > { %s2505_s25 = smov %s1997_s26  ;;  %s2506_s26 = smov %s2102_s10 }
 0xa4e   : > { %s2507_s27 = smov %s2090_s30  ;;  %29 = sbr.rel (!%p27_p3) target bundleno = 11 (0xb), region = 122 }
 0xa55   :  { %1446 = vsyncpa [#allocation4], 1 }
 0xa56   :  { %1448 = vsyncpa [#allocation4 + $0x1], 1 }
 0xa57   :  { %1449 = vsyncpa [#allocation7], 1 }
 0xa58   :  { %1451 = vsyncpa [#allocation7 + $0x1], 1 }
 0xa59   :  { %1452 = vsyncpa [#allocation5], 1 }
 0xa5a   :  { %1454 = vsyncpa [#allocation5 + $0x1], 1 }
 0xa5b   :  { %1455 = vsyncpa [#allocation10], 1 }
 0xa5c   :  { %1457 = vsyncpa [#allocation10 + $0x1], 1 }

</bundles_post_ra>
